<compile_context>
chip_gen: v5e
topology: v5e:2x2
jax: 0.10.0
libtpu: 0.0.40
codegen_flags: <defaults>
</compile_context>

<pallas_src>
import functools

import numpy as np
import jax
import jax.numpy as jnp
from jax import lax
from jax.experimental import pallas as pl
from jax.experimental.pallas import tpu as pltpu


def _column_masks(n_rows, W):
    """(2, n_rows*W) f32 column-validity masks for a row-major flattened tile:
    row 0: left neighbour valid (w >= 1); row 1: right neighbour valid (w <= W-2)."""
    col = np.tile(np.arange(W), n_rows)
    return jnp.asarray(np.stack([(col >= 1), (col <= W - 2)]).astype(np.float32))


def _im2col_taps(act, left, right, W, out_dtype):
    """act: (C, L) flattened row-major activation.  left/right: (1, L) column masks.
    Returns the (9C, L) patch matrix (tap-major dh*3+dw, channel-minor) in out_dtype.
    Vertical (dh) validity is handled by the caller (zeroed halo rows), so only the
    dw==0 / dw==2 taps need a mask multiply; dw==1 taps are used as-is."""
    taps = []
    for dh in range(3):
        for dw in range(3):
            off = (dh - 1) * W + (dw - 1)          # neighbour offset in flat coords
            shifted = act if off == 0 else jnp.roll(act, -off, axis=1)
            if dw == 0:
                shifted = shifted * left
            elif dw == 2:
                shifted = shifted * right
            taps.append(shifted.astype(out_dtype))  # no-op if already out_dtype
    # TODO(synk): v7x VMEM lever -- accumulate 9 per-tap (C,C)@(C,L) matmuls instead of
    #             materialising this (9C, L) patch (trade K-depth for residency).
    return jnp.concatenate(taps, axis=0)


def resblock_kernel(x_ref, xtop_ref, xbot_ref, w1_ref, b1_ref, w2_ref, b2_ref,
                    cmask_ref, rs_ref, o_ref, *, W, TH, compute_dtype, early_cast):
    # x_ref    : (1, C, TH*W)   f32  -- the output tile's rows
    # xtop_ref : (1, C, 2*W)    f32  -- the 2 rows above the tile (clamped at t==0)
    # xbot_ref : (1, C, 2*W)    f32  -- the 2 rows below the tile (clamped at t==last)
    # w*_ref   : (C, 9*C)       compute_dtype (resident; constant index_map)
    # b*_ref   : (C, 1)         f32
    # cmask_ref: (2, (TH+4)*W)  f32  -- tile-invariant column masks
    # rs_ref   : (1,)           f32 in SMEM (runtime res_scale)
    t = pl.program_id(1)
    nt = pl.num_programs(1)
    L_in = (TH + 4) * W          # working block rows: tile + 2-row halo each side
    L_h1 = (TH + 2) * W          # conv1 rows kept for conv2: tile + 1-row halo

    x_tile = x_ref[0]                                           # (C, TH*W) f32
    # Halo rows, zeroed at the image top/bottom -> exact zero-padding semantics.
    top = xtop_ref[0] * (t > 0).astype(jnp.float32)             # (C, 2W)
    bot = xbot_ref[0] * (t < nt - 1).astype(jnp.float32)        # (C, 2W)
    xw = jnp.concatenate([top, x_tile, bot], axis=1)            # (C, L_in) f32

    cmask = cmask_ref[...]
    if early_cast:
        # v6e/v7x: do rolls + mask multiplies in the (packed) compute dtype.
        act1 = xw.astype(compute_dtype)
        cmask = cmask.astype(compute_dtype)
    else:
        # v5e: keep VPU/XLU math in f32; taps are cast individually in _im2col_taps.
        act1 = xw
    left, right = cmask[0:1, :], cmask[1:2, :]

    # ---- conv1 + bias + ReLU: one deep-K MXU matmul over the whole working block ----
    p1 = _im2col_taps(act1, left, right, W, compute_dtype)              # (9C, L_in)
    h1 = jnp.dot(w1_ref[...], p1, preferred_element_type=jnp.float32)   # (C, L_in) f32
    h1 = jnp.maximum(h1 + b1_ref[...], 0.0)

    # Keep the TH+2 rows conv2 needs (drop the wrap-garbage edge rows), and zero the
    # halo rows that fall outside the image so they act as conv2's zero padding.
    q = lax.broadcasted_iota(jnp.int32, (1, L_h1), 1)
    valid = ((q >= W) | (t > 0)) & ((q < (TH + 1) * W) | (t < nt - 1))
    h1 = h1[:, W:(TH + 3) * W] * valid.astype(jnp.float32)              # (C, L_h1)

    # ---- conv2 + bias ----
    act2 = h1.astype(compute_dtype) if early_cast else h1
    p2 = _im2col_taps(act2, left[:, :L_h1], right[:, :L_h1], W, compute_dtype)
    res = jnp.dot(w2_ref[...], p2, preferred_element_type=jnp.float32) + b2_ref[...]
    res = res[:, W:(TH + 1) * W]                                        # (C, TH*W)

    # ---- scale + residual add (f32), lane-dense store ----
    o_ref[0] = (res * rs_ref[0] + x_tile).astype(o_ref.dtype)


def _pick_block_rows(H, target):
    """Largest TH <= target with H % TH == 0 and TH even (or TH == H)."""
    for th in range(min(target, H), 0, -1):
        if H % th == 0 and (th % 2 == 0 or th == H):
            return th
    return H


def _vmem_limit_bytes(C, TH, W, cbytes):
    """Rough per-step VMEM need (temporaries + double-buffered pipeline), clamped to a
    per-generation-safe cap (<= 3/4 of physical VMEM; 48 MiB fallback for v7x)."""
    L_in, L_h1 = (TH + 4) * W, (TH + 2) * W
    temps = (C * L_in * (4 + cbytes) + 9 * C * L_in * cbytes + 2 * C * L_in * 4
             + C * L_h1 * (4 + cbytes) + 9 * C * L_h1 * cbytes + 2 * C * L_h1 * 4
             + C * TH * W * 4)
    pipe = 2 * (C * (TH + 4) * W * 4 + C * TH * W * 4
                + 2 * C * 9 * C * cbytes + 2 * (TH + 4) * W * 4)
    want = int(1.5 * (temps + pipe)) + (4 << 20)
    try:
        cap = int(pltpu.get_tpu_info().vmem_capacity_bytes) * 3 // 4
    except Exception:
        cap = 48 << 20
    return max(32 << 20, min(want, cap))


@functools.partial(jax.jit,
                   static_argnames=("compute_dtype", "block_rows", "early_cast"))
def resblock(x_nchw, w1_oihw, b1, w2_oihw, b2, res_scale=1.0, *,
             compute_dtype=jnp.bfloat16, block_rows=16, early_cast=True):
    """x_nchw: (N, C, H, W) f32; weights OIHW (C, C, 3, 3); biases (C,)."""
    N, C, H, W = x_nchw.shape
    assert H >= 2, "need at least 2 rows"
    TH = _pick_block_rows(H, block_rows)
    nt = H // TH
    half = TH // 2                       # halo blocks are 2 rows = 2*W flat elements

    x2d = x_nchw.reshape(N, C, H * W)    # free reshape (contiguous dims)
    # OIHW -> (C_out, dh, dw, C_in) -> (C_out, 9*C_in), matching the tap row order.
    w1_2d = jnp.transpose(w1_oihw, (0, 2, 3, 1)).reshape(C, 9 * C).astype(compute_dtype)
    w2_2d = jnp.transpose(w2_oihw, (0, 2, 3, 1)).reshape(C, 9 * C).astype(compute_dtype)
    b1c = b1.astype(jnp.float32).reshape(C, 1)
    b2c = b2.astype(jnp.float32).reshape(C, 1)
    cmask = _column_masks(TH + 4, W)                       # (2, (TH+4)*W), tiny
    rs = jnp.asarray(res_scale, jnp.float32).reshape(1)

    kernel = functools.partial(resblock_kernel, W=W, TH=TH,
                               compute_dtype=compute_dtype, early_cast=early_cast)

    max_halo_blk = max(H // 2 - 1, 0)
    grid_spec = pltpu.PrefetchScalarGridSpec(
        num_scalar_prefetch=0,
        grid=(N, nt),
        in_specs=[
            # x tile (lane-dense flat spatial axis)
            pl.BlockSpec((1, C, TH * W), lambda n, t: (n, 0, t)),
            # 2-row halo above the tile (clamped at the top edge; zeroed in-kernel)
            pl.BlockSpec((1, C, 2 * W),
                         lambda n, t: (n, 0, jnp.maximum(t * half - 1, 0))),
            # 2-row halo below the tile (clamped at the bottom edge; zeroed in-kernel)
            pl.BlockSpec((1, C, 2 * W),
                         lambda n, t: (n, 0, jnp.minimum((t + 1) * half, max_halo_blk))),
            pl.BlockSpec((C, 9 * C), lambda n, t: (0, 0)),            # w1 (resident)
            pl.BlockSpec((C, 1), lambda n, t: (0, 0)),                # b1
            pl.BlockSpec((C, 9 * C), lambda n, t: (0, 0)),            # w2 (resident)
            pl.BlockSpec((C, 1), lambda n, t: (0, 0)),                # b2
            pl.BlockSpec((2, (TH + 4) * W), lambda n, t: (0, 0)),     # column masks
            pl.BlockSpec(memory_space=pltpu.MemorySpace.SMEM),        # res_scale scalar
        ],
        out_specs=pl.BlockSpec((1, C, TH * W), lambda n, t: (n, 0, t)),
    )

    out2d = pl.pallas_call(
        kernel,
        out_shape=jax.ShapeDtypeStruct((N, C, H * W), x_nchw.dtype),
        grid_spec=grid_spec,
        compiler_params=pltpu.CompilerParams(
            # Both axes are independent -> shardable across v7x's 2 TensorCores
            # even at N=1 inference.
            dimension_semantics=("parallel", "parallel"),
            vmem_limit_bytes=_vmem_limit_bytes(
                C, TH, W, jnp.dtype(compute_dtype).itemsize)),
    )(x2d, x2d, x2d, w1_2d, b1c, w2_2d, b2c, cmask, rs)

    return out2d.reshape(N, C, H, W)


def resblock_reference(x_nchw, w1_oihw, b1, w2_oihw, b2, res_scale=1.0):
    """Pure-JAX f32 reference (matches the PyTorch ResBlock with default_conv)."""
    dn = lax.conv_dimension_numbers(x_nchw.shape, w1_oihw.shape,
                                    ("NCHW", "OIHW", "NCHW"))
    y = lax.conv_general_dilated(x_nchw, w1_oihw, (1, 1), [(1, 1), (1, 1)],
                                 dimension_numbers=dn) + b1[None, :, None, None]
    y = jnp.maximum(y, 0.0)
    y = lax.conv_general_dilated(y, w2_oihw, (1, 1), [(1, 1), (1, 1)],
                                 dimension_numbers=dn) + b2[None, :, None, None]
    return y * res_scale + x_nchw


if __name__ == "__main__":
    key = jax.random.PRNGKey(0)
    # Small demo shape chosen so the row-tiled path (block_rows=8 -> 4 tiles, with
    # interior + boundary tiles) is exercised and all blocks are (8,128)-aligned.
    # NOTE: do NOT draw perf conclusions here -- validate perf at real n_feats / H / W.
    N, C, H, W = 2, 8, 32, 128

    kx, kw1, kb1, kw2, kb2 = jax.random.split(key, 5)
    x = jax.random.normal(kx, (N, C, H, W), jnp.float32)
    w1 = jax.random.normal(kw1, (C, C, 3, 3), jnp.float32) * 0.1
    b1 = jax.random.normal(kb1, (C,), jnp.float32) * 0.1
    w2 = jax.random.normal(kw2, (C, C, 3, 3), jnp.float32) * 0.1
    b2 = jax.random.normal(kb2, (C,), jnp.float32) * 0.1

    ref = resblock_reference(x, w1, b1, w2, b2, res_scale=0.5)

    # Exactness of the roll/mask im2col + halo-tiling decomposition (f32 MXU operands).
    out_f32 = resblock(x, w1, b1, w2, b2, 0.5,
                       compute_dtype=jnp.float32, block_rows=8)
    jax.block_until_ready(out_f32)
    assert out_f32.shape == (N, C, H, W)
    assert jnp.allclose(out_f32, ref, atol=5e-3, rtol=5e-3), "f32 mismatch vs reference"

    # Recommended fast path (v6e/v7x): bf16 MXU/roll/mask operands, f32 accumulation.
    out_bf16 = resblock(x, w1, b1, w2, b2, 0.5, block_rows=8)
    jax.block_until_ready(out_bf16)
    assert jnp.allclose(out_bf16, ref, atol=5e-2, rtol=5e-2), "bf16 mismatch vs reference"

    print("KERNEL_OK")
</pallas_src>

<mosaic_0001>
module attributes {stable_mosaic.version = 11 : i64} {
  func.func @resblock_kernel(%arg0: i32, %arg1: i32, %arg2: memref<1x8x1024xf32, #tpu.memory_space<vmem>>, %arg3: memref<1x8x256xf32, #tpu.memory_space<vmem>>, %arg4: memref<1x8x256xf32, #tpu.memory_space<vmem>>, %arg5: memref<8x72xf32, #tpu.memory_space<vmem>>, %arg6: memref<8x1xf32, #tpu.memory_space<vmem>>, %arg7: memref<8x72xf32, #tpu.memory_space<vmem>>, %arg8: memref<8x1xf32, #tpu.memory_space<vmem>>, %arg9: memref<2x1536xf32, #tpu.memory_space<vmem>>, %arg10: memref<1xf32, #tpu.memory_space<smem>>, %arg11: memref<1x8x1024xf32, #tpu.memory_space<vmem>>) attributes {dimension_semantics = [#tpu.dimension_semantics<parallel>, #tpu.dimension_semantics<parallel>], iteration_bounds = array<i64: 2, 4>, scalar_prefetch = 0 : i64, scratch_operands = 0 : i64, tpu.core_type = #tpu.core_type<tc>, window_params = [{transform_indices = @transform_0, window_bounds = array<i64: 1, 8, 1024>}, {transform_indices = @transform_1, window_bounds = array<i64: 1, 8, 256>}, {transform_indices = @transform_2, window_bounds = array<i64: 1, 8, 256>}, {pipeline_mode = #tpu.pipeline_mode<synchronous>, transform_indices = @transform_3, window_bounds = array<i64: 8, 72>}, {pipeline_mode = #tpu.pipeline_mode<synchronous>, transform_indices = @transform_4, window_bounds = array<i64: 8, 1>}, {pipeline_mode = #tpu.pipeline_mode<synchronous>, transform_indices = @transform_5, window_bounds = array<i64: 8, 72>}, {pipeline_mode = #tpu.pipeline_mode<synchronous>, transform_indices = @transform_6, window_bounds = array<i64: 8, 1>}, {pipeline_mode = #tpu.pipeline_mode<synchronous>, transform_indices = @transform_7, window_bounds = array<i64: 2, 1536>}, {transform_indices = @transform_8, window_bounds = array<i64: 1>}, {transform_indices = @transform_9, window_bounds = array<i64: 1, 8, 1024>}]} {
    %c0 = arith.constant 0 : index
    %c0_0 = arith.constant 0 : index
    %c0_1 = arith.constant 0 : index
    %0 = vector.load %arg2[%c0, %c0_0, %c0_1] : memref<1x8x1024xf32, #tpu.memory_space<vmem>>, vector<1x8x1024xf32>
    %1 = vector.shape_cast %0 : vector<1x8x1024xf32> to vector<8x1024xf32>
    %c0_2 = arith.constant 0 : index
    %c0_3 = arith.constant 0 : index
    %c0_4 = arith.constant 0 : index
    %2 = vector.load %arg3[%c0_2, %c0_3, %c0_4] : memref<1x8x256xf32, #tpu.memory_space<vmem>>, vector<1x8x256xf32>
    %3 = vector.shape_cast %2 : vector<1x8x256xf32> to vector<8x256xf32>
    %c0_i32 = arith.constant 0 : i32
    %4 = arith.cmpi sgt, %arg1, %c0_i32 : i32
    %5 = arith.extui %4 : i1 to i32
    %6 = arith.sitofp %5 : i32 to f32
    %7 = vector.broadcast %6 : f32 to vector<8x256xf32>
    %8 = arith.mulf %3, %7 : vector<8x256xf32>
    %c0_5 = arith.constant 0 : index
    %c0_6 = arith.constant 0 : index
    %c0_7 = arith.constant 0 : index
    %9 = vector.load %arg4[%c0_5, %c0_6, %c0_7] : memref<1x8x256xf32, #tpu.memory_space<vmem>>, vector<1x8x256xf32>
    %10 = vector.shape_cast %9 : vector<1x8x256xf32> to vector<8x256xf32>
    %c3_i32 = arith.constant 3 : i32
    %11 = arith.cmpi slt, %arg1, %c3_i32 : i32
    %12 = arith.extui %11 : i1 to i32
    %13 = arith.sitofp %12 : i32 to f32
    %14 = vector.broadcast %13 : f32 to vector<8x256xf32>
    %15 = arith.mulf %10, %14 : vector<8x256xf32>
    %16 = tpu.concatenate %8, %1, %15 in 1 : vector<8x256xf32>, vector<8x1024xf32>, vector<8x256xf32> -> vector<8x1536xf32>
    %c0_8 = arith.constant 0 : index
    %c0_9 = arith.constant 0 : index
    %17 = vector.load %arg9[%c0_8, %c0_9] : memref<2x1536xf32, #tpu.memory_space<vmem>>, vector<2x1536xf32>
    %18 = vector.extract_strided_slice %17 {offsets = [0, 0], sizes = [1, 1536], strides = [1, 1]} : vector<2x1536xf32> to vector<1x1536xf32>
    %19 = vector.extract_strided_slice %17 {offsets = [1, 0], sizes = [1, 1536], strides = [1, 1]} : vector<2x1536xf32> to vector<1x1536xf32>
    %20 = vector.extract_strided_slice %16 {offsets = [0, 1407], sizes = [8, 129], strides = [1, 1]} : vector<8x1536xf32> to vector<8x129xf32>
    %21 = vector.extract_strided_slice %16 {offsets = [0, 0], sizes = [8, 1407], strides = [1, 1]} : vector<8x1536xf32> to vector<8x1407xf32>
    %22 = tpu.concatenate %20, %21 in 1 : vector<8x129xf32>, vector<8x1407xf32> -> vector<8x1536xf32>
    %23 = vector.broadcast %18 : vector<1x1536xf32> to vector<8x1536xf32>
    %24 = arith.mulf %22, %23 : vector<8x1536xf32>
    %25 = vector.extract_strided_slice %16 {offsets = [0, 1408], sizes = [8, 128], strides = [1, 1]} : vector<8x1536xf32> to vector<8x128xf32>
    %26 = vector.extract_strided_slice %16 {offsets = [0, 0], sizes = [8, 1408], strides = [1, 1]} : vector<8x1536xf32> to vector<8x1408xf32>
    %27 = tpu.concatenate %25, %26 in 1 : vector<8x128xf32>, vector<8x1408xf32> -> vector<8x1536xf32>
    %28 = vector.extract_strided_slice %16 {offsets = [0, 1409], sizes = [8, 127], strides = [1, 1]} : vector<8x1536xf32> to vector<8x127xf32>
    %29 = vector.extract_strided_slice %16 {offsets = [0, 0], sizes = [8, 1409], strides = [1, 1]} : vector<8x1536xf32> to vector<8x1409xf32>
    %30 = tpu.concatenate %28, %29 in 1 : vector<8x127xf32>, vector<8x1409xf32> -> vector<8x1536xf32>
    %31 = vector.broadcast %19 : vector<1x1536xf32> to vector<8x1536xf32>
    %32 = arith.mulf %30, %31 : vector<8x1536xf32>
    %33 = vector.extract_strided_slice %16 {offsets = [0, 1535], sizes = [8, 1], strides = [1, 1]} : vector<8x1536xf32> to vector<8x1xf32>
    %34 = vector.extract_strided_slice %16 {offsets = [0, 0], sizes = [8, 1535], strides = [1, 1]} : vector<8x1536xf32> to vector<8x1535xf32>
    %35 = tpu.concatenate %33, %34 in 1 : vector<8x1xf32>, vector<8x1535xf32> -> vector<8x1536xf32>
    %36 = vector.broadcast %18 : vector<1x1536xf32> to vector<8x1536xf32>
    %37 = arith.mulf %35, %36 : vector<8x1536xf32>
    %38 = vector.extract_strided_slice %16 {offsets = [0, 1], sizes = [8, 1535], strides = [1, 1]} : vector<8x1536xf32> to vector<8x1535xf32>
    %39 = vector.extract_strided_slice %16 {offsets = [0, 0], sizes = [8, 1], strides = [1, 1]} : vector<8x1536xf32> to vector<8x1xf32>
    %40 = tpu.concatenate %38, %39 in 1 : vector<8x1535xf32>, vector<8x1xf32> -> vector<8x1536xf32>
    %41 = vector.broadcast %19 : vector<1x1536xf32> to vector<8x1536xf32>
    %42 = arith.mulf %40, %41 : vector<8x1536xf32>
    %43 = vector.extract_strided_slice %16 {offsets = [0, 127], sizes = [8, 1409], strides = [1, 1]} : vector<8x1536xf32> to vector<8x1409xf32>
    %44 = vector.extract_strided_slice %16 {offsets = [0, 0], sizes = [8, 127], strides = [1, 1]} : vector<8x1536xf32> to vector<8x127xf32>
    %45 = tpu.concatenate %43, %44 in 1 : vector<8x1409xf32>, vector<8x127xf32> -> vector<8x1536xf32>
    %46 = vector.broadcast %18 : vector<1x1536xf32> to vector<8x1536xf32>
    %47 = arith.mulf %45, %46 : vector<8x1536xf32>
    %48 = vector.extract_strided_slice %16 {offsets = [0, 128], sizes = [8, 1408], strides = [1, 1]} : vector<8x1536xf32> to vector<8x1408xf32>
    %49 = vector.extract_strided_slice %16 {offsets = [0, 0], sizes = [8, 128], strides = [1, 1]} : vector<8x1536xf32> to vector<8x128xf32>
    %50 = tpu.concatenate %48, %49 in 1 : vector<8x1408xf32>, vector<8x128xf32> -> vector<8x1536xf32>
    %51 = vector.extract_strided_slice %16 {offsets = [0, 129], sizes = [8, 1407], strides = [1, 1]} : vector<8x1536xf32> to vector<8x1407xf32>
    %52 = vector.extract_strided_slice %16 {offsets = [0, 0], sizes = [8, 129], strides = [1, 1]} : vector<8x1536xf32> to vector<8x129xf32>
    %53 = tpu.concatenate %51, %52 in 1 : vector<8x1407xf32>, vector<8x129xf32> -> vector<8x1536xf32>
    %54 = vector.broadcast %19 : vector<1x1536xf32> to vector<8x1536xf32>
    %55 = arith.mulf %53, %54 : vector<8x1536xf32>
    %56 = tpu.concatenate %24, %27, %32, %37, %16, %42, %47, %50, %55 in 0 : vector<8x1536xf32>, vector<8x1536xf32>, vector<8x1536xf32>, vector<8x1536xf32>, vector<8x1536xf32>, vector<8x1536xf32>, vector<8x1536xf32>, vector<8x1536xf32>, vector<8x1536xf32> -> vector<72x1536xf32>
    %c0_10 = arith.constant 0 : index
    %c0_11 = arith.constant 0 : index
    %57 = vector.load %arg5[%c0_10, %c0_11] : memref<8x72xf32, #tpu.memory_space<vmem>>, vector<8x72xf32>
    %cst = arith.constant dense<0.000000e+00> : vector<8x1536xf32>
    %58 = tpu.matmul %57, %56, %cst {dimension_numbers = #tpu.dot_dimension_numbers<[1], [0], [0], [1], [0, 0, 1, 1], [], []>} : vector<8x72xf32>, vector<72x1536xf32>, vector<8x1536xf32> -> vector<8x1536xf32>
    %c0_12 = arith.constant 0 : index
    %c0_13 = arith.constant 0 : index
    %59 = vector.load %arg6[%c0_12, %c0_13] : memref<8x1xf32, #tpu.memory_space<vmem>>, vector<8x1xf32>
    %60 = vector.broadcast %59 : vector<8x1xf32> to vector<8x1536xf32>
    %61 = arith.addf %58, %60 : vector<8x1536xf32>
    %cst_14 = arith.constant 0.000000e+00 : f32
    %62 = vector.broadcast %cst_14 : f32 to vector<8x1536xf32>
    %63 = arith.maximumf %61, %62 : vector<8x1536xf32>
    %64 = tpu.iota {dimensions = array<i32: 1>} : vector<1x1280xi32>
    %c128_i32 = arith.constant 128 : i32
    %65 = vector.broadcast %c128_i32 : i32 to vector<1x1280xi32>
    %66 = arith.cmpi sge, %64, %65 : vector<1x1280xi32>
    %c0_i32_15 = arith.constant 0 : i32
    %67 = arith.cmpi sgt, %arg1, %c0_i32_15 : i32
    %68 = vector.broadcast %67 : i1 to vector<1x1280xi1>
    %69 = arith.ori %66, %68 : vector<1x1280xi1>
    %c1152_i32 = arith.constant 1152 : i32
    %70 = vector.broadcast %c1152_i32 : i32 to vector<1x1280xi32>
    %71 = arith.cmpi slt, %64, %70 : vector<1x1280xi32>
    %c3_i32_16 = arith.constant 3 : i32
    %72 = arith.cmpi slt, %arg1, %c3_i32_16 : i32
    %73 = vector.broadcast %72 : i1 to vector<1x1280xi1>
    %74 = arith.ori %71, %73 : vector<1x1280xi1>
    %75 = arith.andi %69, %74 : vector<1x1280xi1>
    %76 = vector.extract_strided_slice %63 {offsets = [0, 128], sizes = [8, 1280], strides = [1, 1]} : vector<8x1536xf32> to vector<8x1280xf32>
    %77 = arith.extui %75 : vector<1x1280xi1> to vector<1x1280xi32>
    %78 = arith.sitofp %77 : vector<1x1280xi32> to vector<1x1280xf32>
    %79 = vector.broadcast %78 : vector<1x1280xf32> to vector<8x1280xf32>
    %80 = arith.mulf %76, %79 : vector<8x1280xf32>
    %81 = vector.extract_strided_slice %18 {offsets = [0, 0], sizes = [1, 1280], strides = [1, 1]} : vector<1x1536xf32> to vector<1x1280xf32>
    %82 = vector.extract_strided_slice %19 {offsets = [0, 0], sizes = [1, 1280], strides = [1, 1]} : vector<1x1536xf32> to vector<1x1280xf32>
    %83 = vector.extract_strided_slice %80 {offsets = [0, 1151], sizes = [8, 129], strides = [1, 1]} : vector<8x1280xf32> to vector<8x129xf32>
    %84 = vector.extract_strided_slice %80 {offsets = [0, 0], sizes = [8, 1151], strides = [1, 1]} : vector<8x1280xf32> to vector<8x1151xf32>
    %85 = tpu.concatenate %83, %84 in 1 : vector<8x129xf32>, vector<8x1151xf32> -> vector<8x1280xf32>
    %86 = vector.broadcast %81 : vector<1x1280xf32> to vector<8x1280xf32>
    %87 = arith.mulf %85, %86 : vector<8x1280xf32>
    %88 = vector.extract_strided_slice %80 {offsets = [0, 1152], sizes = [8, 128], strides = [1, 1]} : vector<8x1280xf32> to vector<8x128xf32>
    %89 = vector.extract_strided_slice %80 {offsets = [0, 0], sizes = [8, 1152], strides = [1, 1]} : vector<8x1280xf32> to vector<8x1152xf32>
    %90 = tpu.concatenate %88, %89 in 1 : vector<8x128xf32>, vector<8x1152xf32> -> vector<8x1280xf32>
    %91 = vector.extract_strided_slice %80 {offsets = [0, 1153], sizes = [8, 127], strides = [1, 1]} : vector<8x1280xf32> to vector<8x127xf32>
    %92 = vector.extract_strided_slice %80 {offsets = [0, 0], sizes = [8, 1153], strides = [1, 1]} : vector<8x1280xf32> to vector<8x1153xf32>
    %93 = tpu.concatenate %91, %92 in 1 : vector<8x127xf32>, vector<8x1153xf32> -> vector<8x1280xf32>
    %94 = vector.broadcast %82 : vector<1x1280xf32> to vector<8x1280xf32>
    %95 = arith.mulf %93, %94 : vector<8x1280xf32>
    %96 = vector.extract_strided_slice %80 {offsets = [0, 1279], sizes = [8, 1], strides = [1, 1]} : vector<8x1280xf32> to vector<8x1xf32>
    %97 = vector.extract_strided_slice %80 {offsets = [0, 0], sizes = [8, 1279], strides = [1, 1]} : vector<8x1280xf32> to vector<8x1279xf32>
    %98 = tpu.concatenate %96, %97 in 1 : vector<8x1xf32>, vector<8x1279xf32> -> vector<8x1280xf32>
    %99 = vector.broadcast %81 : vector<1x1280xf32> to vector<8x1280xf32>
    %100 = arith.mulf %98, %99 : vector<8x1280xf32>
    %101 = vector.extract_strided_slice %80 {offsets = [0, 1], sizes = [8, 1279], strides = [1, 1]} : vector<8x1280xf32> to vector<8x1279xf32>
    %102 = vector.extract_strided_slice %80 {offsets = [0, 0], sizes = [8, 1], strides = [1, 1]} : vector<8x1280xf32> to vector<8x1xf32>
    %103 = tpu.concatenate %101, %102 in 1 : vector<8x1279xf32>, vector<8x1xf32> -> vector<8x1280xf32>
    %104 = vector.broadcast %82 : vector<1x1280xf32> to vector<8x1280xf32>
    %105 = arith.mulf %103, %104 : vector<8x1280xf32>
    %106 = vector.extract_strided_slice %80 {offsets = [0, 127], sizes = [8, 1153], strides = [1, 1]} : vector<8x1280xf32> to vector<8x1153xf32>
    %107 = vector.extract_strided_slice %80 {offsets = [0, 0], sizes = [8, 127], strides = [1, 1]} : vector<8x1280xf32> to vector<8x127xf32>
    %108 = tpu.concatenate %106, %107 in 1 : vector<8x1153xf32>, vector<8x127xf32> -> vector<8x1280xf32>
    %109 = vector.broadcast %81 : vector<1x1280xf32> to vector<8x1280xf32>
    %110 = arith.mulf %108, %109 : vector<8x1280xf32>
    %111 = vector.extract_strided_slice %80 {offsets = [0, 128], sizes = [8, 1152], strides = [1, 1]} : vector<8x1280xf32> to vector<8x1152xf32>
    %112 = vector.extract_strided_slice %80 {offsets = [0, 0], sizes = [8, 128], strides = [1, 1]} : vector<8x1280xf32> to vector<8x128xf32>
    %113 = tpu.concatenate %111, %112 in 1 : vector<8x1152xf32>, vector<8x128xf32> -> vector<8x1280xf32>
    %114 = vector.extract_strided_slice %80 {offsets = [0, 129], sizes = [8, 1151], strides = [1, 1]} : vector<8x1280xf32> to vector<8x1151xf32>
    %115 = vector.extract_strided_slice %80 {offsets = [0, 0], sizes = [8, 129], strides = [1, 1]} : vector<8x1280xf32> to vector<8x129xf32>
    %116 = tpu.concatenate %114, %115 in 1 : vector<8x1151xf32>, vector<8x129xf32> -> vector<8x1280xf32>
    %117 = vector.broadcast %82 : vector<1x1280xf32> to vector<8x1280xf32>
    %118 = arith.mulf %116, %117 : vector<8x1280xf32>
    %119 = tpu.concatenate %87, %90, %95, %100, %80, %105, %110, %113, %118 in 0 : vector<8x1280xf32>, vector<8x1280xf32>, vector<8x1280xf32>, vector<8x1280xf32>, vector<8x1280xf32>, vector<8x1280xf32>, vector<8x1280xf32>, vector<8x1280xf32>, vector<8x1280xf32> -> vector<72x1280xf32>
    %c0_17 = arith.constant 0 : index
    %c0_18 = arith.constant 0 : index
    %120 = vector.load %arg7[%c0_17, %c0_18] : memref<8x72xf32, #tpu.memory_space<vmem>>, vector<8x72xf32>
    %cst_19 = arith.constant dense<0.000000e+00> : vector<8x1280xf32>
    %121 = tpu.matmul %120, %119, %cst_19 {dimension_numbers = #tpu.dot_dimension_numbers<[1], [0], [0], [1], [0, 0, 1, 1], [], []>} : vector<8x72xf32>, vector<72x1280xf32>, vector<8x1280xf32> -> vector<8x1280xf32>
    %c0_20 = arith.constant 0 : index
    %c0_21 = arith.constant 0 : index
    %122 = vector.load %arg8[%c0_20, %c0_21] : memref<8x1xf32, #tpu.memory_space<vmem>>, vector<8x1xf32>
    %123 = vector.broadcast %122 : vector<8x1xf32> to vector<8x1280xf32>
    %124 = arith.addf %121, %123 : vector<8x1280xf32>
    %125 = vector.extract_strided_slice %124 {offsets = [0, 128], sizes = [8, 1024], strides = [1, 1]} : vector<8x1280xf32> to vector<8x1024xf32>
    %c0_22 = arith.constant 0 : index
    %126 = memref.load %arg10[%c0_22] : memref<1xf32, #tpu.memory_space<smem>>
    %127 = vector.broadcast %126 : f32 to vector<8x1024xf32>
    %128 = arith.mulf %125, %127 : vector<8x1024xf32>
    %129 = arith.addf %128, %1 : vector<8x1024xf32>
    %c0_23 = arith.constant 0 : index
    %c0_24 = arith.constant 0 : index
    %c0_25 = arith.constant 0 : index
    %130 = vector.load %arg11[%c0_23, %c0_24, %c0_25] : memref<1x8x1024xf32, #tpu.memory_space<vmem>>, vector<1x8x1024xf32>
    %131 = vector.shape_cast %130 : vector<1x8x1024xf32> to vector<8x1024xf32>
    %132 = vector.shape_cast %129 : vector<8x1024xf32> to vector<1x8x1024xf32>
    tpu.vector_store %arg11[%c0_23, %c0_24, %c0_25], %132 {strides = array<i32>} : memref<1x8x1024xf32, #tpu.memory_space<vmem>>, vector<1x8x1024xf32>,
    return
  }
  func.func @transform_0(%arg0: i32, %arg1: i32) -> (i32, i32, i32) {
    %c0_i32 = arith.constant 0 : i32
    %c0_i32_0 = arith.constant 0 : i32
    return %arg0, %c0_i32, %arg1 : i32, i32, i32
  }
  func.func @transform_1(%arg0: i32, %arg1: i32) -> (i32, i32, i32) {
    %c4_i32 = arith.constant 4 : i32
    %0 = arith.muli %arg1, %c4_i32 : i32
    %c1_i32 = arith.constant 1 : i32
    %1 = arith.subi %0, %c1_i32 : i32
    %c0_i32 = arith.constant 0 : i32
    %2 = arith.maxsi %1, %c0_i32 : i32
    %c0_i32_0 = arith.constant 0 : i32
    %c0_i32_1 = arith.constant 0 : i32
    return %arg0, %c0_i32_0, %2 : i32, i32, i32
  }
  func.func @transform_2(%arg0: i32, %arg1: i32) -> (i32, i32, i32) {
    %c1_i32 = arith.constant 1 : i32
    %0 = arith.addi %arg1, %c1_i32 : i32
    %c4_i32 = arith.constant 4 : i32
    %1 = arith.muli %0, %c4_i32 : i32
    %c15_i32 = arith.constant 15 : i32
    %2 = arith.minsi %1, %c15_i32 : i32
    %c0_i32 = arith.constant 0 : i32
    %c0_i32_0 = arith.constant 0 : i32
    return %arg0, %c0_i32, %2 : i32, i32, i32
  }
  func.func @transform_3(%arg0: i32, %arg1: i32) -> (i32, i32) {
    %c0_i32 = arith.constant 0 : i32
    %c0_i32_0 = arith.constant 0 : i32
    %c0_i32_1 = arith.constant 0 : i32
    return %c0_i32, %c0_i32_0 : i32, i32
  }
  func.func @transform_4(%arg0: i32, %arg1: i32) -> (i32, i32) {
    %c0_i32 = arith.constant 0 : i32
    %c0_i32_0 = arith.constant 0 : i32
    %c0_i32_1 = arith.constant 0 : i32
    return %c0_i32, %c0_i32_0 : i32, i32
  }
  func.func @transform_5(%arg0: i32, %arg1: i32) -> (i32, i32) {
    %c0_i32 = arith.constant 0 : i32
    %c0_i32_0 = arith.constant 0 : i32
    %c0_i32_1 = arith.constant 0 : i32
    return %c0_i32, %c0_i32_0 : i32, i32
  }
  func.func @transform_6(%arg0: i32, %arg1: i32) -> (i32, i32) {
    %c0_i32 = arith.constant 0 : i32
    %c0_i32_0 = arith.constant 0 : i32
    %c0_i32_1 = arith.constant 0 : i32
    return %c0_i32, %c0_i32_0 : i32, i32
  }
  func.func @transform_7(%arg0: i32, %arg1: i32) -> (i32, i32) {
    %c0_i32 = arith.constant 0 : i32
    %c0_i32_0 = arith.constant 0 : i32
    %c0_i32_1 = arith.constant 0 : i32
    return %c0_i32, %c0_i32_0 : i32, i32
  }
  func.func @transform_8(%arg0: i32, %arg1: i32) -> i32 {
    %c0_i32 = arith.constant 0 : i32
    %c0_i32_0 = arith.constant 0 : i32
    return %c0_i32 : i32
  }
  func.func @transform_9(%arg0: i32, %arg1: i32) -> (i32, i32, i32) {
    %c0_i32 = arith.constant 0 : i32
    %c0_i32_0 = arith.constant 0 : i32
    return %arg0, %c0_i32, %arg1 : i32, i32, i32
  }
}

</mosaic_0001>

<bundles_post_ra>
// kernel: resblock.1
= control target key start
LH: loop header
LB: loop body
LE: loop exit
PB: predicated region body
PF: predicated region fallthrough
CT: control target
= control target key end

     0   :  { %s1746_s11 = smov 0   ;;  %s1748_s12 = smov 0   ;;  %s2453_s0 = inlined_call_operand.vmem [shape: f32[2,8,4096], index: 0, kind: input, shape index: {}, may-alias: {0,1,2}]   ;;  %s2454_s1 = inlined_call_operand.vmem [shape: f32[2,8,4096], index: 1, kind: input, shape index: {}, may-alias: {0,1,2}]   ;;  %s2455_s2 = inlined_call_operand.vmem [shape: f32[2,8,4096], index: 2, kind: input, shape index: {}, may-alias: {0,1,2}]   ;;  %s2456_s3 = inlined_call_operand.vmem [shape: f32[8,72], index: 3, kind: input, shape index: {}]   ;;  %s2457_s4 = inlined_call_operand.vmem [shape: f32[8,1], index: 4, kind: input, shape index: {}]   ;;  %s2458_s5 = inlined_call_operand.vmem [shape: f32[8,72], index: 5, kind: input, shape index: {}]   ;;  %s2459_s6 = inlined_call_operand.vmem [shape: f32[8,1], index: 6, kind: input, shape index: {}]   ;;  %s2460_s7 = inlined_call_operand.vmem [shape: f32[2,1536], index: 7, kind: input, shape index: {}]   ;;  %s2461_s8 = inlined_call_operand.<no memory space> [shape: f32[1], index: 8, kind: input, shape index: {}]   ;;  %s2462_s9 = inlined_call_operand.vmem [shape: f32[2,8,4096], index: 9, kind: output, shape index: {}]  }
   0x1   :  { %14 = sst [smem:[#allocation2]] %s2461_s8  ;;  %s1750_s13 = smov 0  }
   0x2   :  { %s1752_s14 = smov 0   ;;  %s1754_s15 = smov 0  }
   0x3 LB: > { %s29_s8 = sadd.s32 1, %s1679_s13  ;;  %s32_s16 = sadd.s32 1, %s1683_s14  ;;  %s1687_s15 = sphi %s1754_s15, %s20_s15   ;;  %s1683_s14 = sphi %s1752_s14, %s2466_s14   ;;  %s1679_s13 = sphi %s1750_s13, %s2465_s13   ;;  %s1675_s12 = sphi %s1748_s12, %s2464_s12   ;;  %s1671_s11 = sphi %s1746_s11, %s2463_s11  }
   0x4   : > { %p30_p0 = scmp.ge.s32.totalorder %s29_s8, 4  ;;  %p1551_p1 = scmp.ge.s32.totalorder %s1687_s15, 1 }
   0x5   : > { %p375_p2 = scmp.lt.s32.totalorder %s1687_s15, 9 }
   0x6   : > { %s2468_s8 = smov (%p30_p0, %s29_s8), 0  ;;  %s2470_s16 = smov (!%p30_p0, %s32_s16), %s1683_s14 }
   0x7   : > { %p376_p3 = pnand %p1551_p1, %p375_p2  ;;  %p34_p4 = scmp.ge.s32.totalorder %s2470_s16, 2 }
   0x8   : > { %s1552_s17 = sshll.u32 (!%p376_p3), %s1671_s11, 3  ;;  %p446_p5 = scmp.lt.s32.totalorder (!%p376_p3), %s1675_s12, 1 }
   0x9   : > { %s2472_s16 = smov (%p34_p4, %s2470_s16), 0  ;;  %379 = sbr.rel (%p376_p3) target bundleno = 639 (0x27f), region = 56 }
   0xa   : > { %p448_p6 = scmp.lt.s32.totalorder (!%p376_p3), %s1552_s17, 31  ;;  %s1555_s20 = sshll.u32 (!%p376_p3), %s1671_s11, 2 }
   0xb   : > { %s1556_s22 = sadd.s32 (!%p376_p3), 4294967295, %s1555_s20  ;;  %p511_p8 = scmp.gt.s32.totalorder (!%p376_p3), %s1671_s11, 0 }
   0xc   : > { %p457_p7 = scmp.gt.s32.totalorder (!%p376_p3), %s1556_s22, 0  ;;  %s1594_s26 = sadd.s32 (!%p376_p3), 4, %s1555_s20 }
   0xd   : > { %s1689_s27 = smov (!%p376_p3), 127   ;;  %s1690_s28 = smov (!%p376_p3), 1  }
   0xe   : > { %s2474_s12 = smov (!%p446_p5, %s1675_s12), 1  ;;  %s2476_s17 = smov (!%p448_p6, %s1552_s17), 31  ;;  %v525_v23 = vld [vmem:[%s2460_s7] sm:$0xff]  ;;  %vm649_vm0 = vcmask 1039360   ;;  %vm562_vm1 = vcmask 7168   ;;  %v1915_v37 = vld [vmem:[%s2460_s7 + $0x8] sm:$0xff] }
   0xf   : > { %s1779_s18 = sshll.u32 %s2474_s12, 5  ;;  %s2478_s22 = smov (!%p457_p7, %s1556_s22), 0  ;;  %v672_v24 = vperm.slane %v525_v23, 7  ;;  %v670_v25 = vperm.slane %v525_v23, 3  ;;  %v671_v26 = vperm.slane %v525_v23, 5  ;;  %v586_v30 = vperm.slane %v525_v23, 2 }
  0x10   : > { %s451_s19 = sadd.s32 %s1779_s18, %s2476_s17  ;;  %s1557_s30 = sshll.u32 %s2478_s22, 1  ;;  %v587_v43 = vperm.slane %v525_v23, 4  ;;  %v588_v44 = vperm.slane %v525_v23, 6  ;;  %v673_v45 = vperm.slane %v1915_v37, 1  ;;  %v1691_v50 = vmov 0   ;;  %v764_v51 = vld [vmem:[%s2457_s4] sm:$0xff] }
  0x11   : > { %s1783_s21 = sshll.u32 %s451_s19, 3  ;;  %p475_p9 = scmp.lt.s32.totalorder %s1594_s26, 15  ;;  %v1896_v27 = vperm.slane %v672_v24, 1  ;;  %v1898_v28 = vperm.slane %v670_v25, 1  ;;  %v1900_v29 = vperm.slane %v671_v26, 1  ;;  %v1922_v41 = vperm.slane %v586_v30, 0  ;;  %1639 = vset.pattern.permute.xlu0 %v1691_v50  ;;  %1640 = vset.pattern.permute.xlu1 %v1691_v50 }
  0x12   : > { %s1789_s25 = scalar_lea.vmem %s2453_s0, %s1783_s21  ;;  %p462_p10 = scmp.lt.s32.totalorder %s1557_s30, 31  ;;  %v1934_v48 = vperm.slane %v587_v43, 0  ;;  %v1936_v49 = vperm.slane %v588_v44, 0  ;;  %v1950_v55 = vperm.slane %v673_v45, 1  ;;  %v589_v62 = vperm.slane %v1915_v37, 0  ;;  %v2024_v44 = vld [vmem:[%s2460_s7 + $0x10] sm:$0xff] }
  0x13   : > { %v1792_v0 = vld [vmem:[%s1789_s25 + $0x10] sm:$0xff]  ;;  %v1795_v1 = vld [vmem:[%s1789_s25] sm:$0xff]  ;;  %s1804_s29 = scalar_select %p511_p8, 1, 0  ;;  %v1808_v2 = vld [vmem:[%s1789_s25 + $0x18] sm:$0xff]  ;;  %v676_v24 = vperm.slane %v1915_v37, 7 }
  0x14   : > { %635 = vrot.lane.b32.xlu1 %v1792_v0, %s1689_s27  ;;  %546 = vrot.lane.b32.xlu2 %v1795_v1, %s1690_s28  ;;  %s2480_s30 = smov (!%p462_p10, %s1557_s30), 31  ;;  %v1811_v3 = vld [vmem:[%s1789_s25 + $0x8] sm:$0xff]  ;;  %s2482_s26 = smov (!%p475_p9, %s1594_s26), 15  ;;  %v1826_v7 = vld [vmem:[%s1789_s25 + $0x20] sm:$0xff]  ;;  %v675_v30 = vperm.slane %v1915_v37, 5  ;;  %vm770_vm2 = vcmask 588800  }
  0x15   : > { %631 = vrot.lane.b32.xlu0 %v1795_v1, %s1689_s27  ;;  %s513_s10 = scvt.s32.f32 %s1804_s29  ;;  %s465_s12 = sadd.s32 %s1779_s18, %s2480_s30  ;;  %v1847_v10 = vld [vmem:[%s1789_s25 + $0x30] sm:$0xff]  ;;  %v1850_v11 = vld [vmem:[%s1789_s25 + $0x38] sm:$0xff]  ;;  %v1854_v12 = vld [vmem:[%s1789_s25 + $0x28] sm:$0xff] }
  0x16   : > { %s1559_s17 = sshll.u32 %s465_s12, 3  ;;  %s1561_s23 = sshll.u32 %s2482_s26, 1  ;;  %v2019_v43 = vperm.slane %v675_v30, 1 }
  0x17   : > { %s467_s22 = scalar_lea.vmem %s2454_s1, %s1559_s17  ;;  %v514_v4 = vstv %s513_s10  ;;  %p480_p11 = scmp.lt.s32.totalorder %s1561_s23, 31 }
  0x18   : > { %v510_v5 = vld [vmem:[%s467_s22 + $0x8] sm:$0xff]  ;;  %v509_v8 = vld [vmem:[%s467_s22] sm:$0xff]  ;;  %p519_p12 = scmp.lt.s32.totalorder %s1671_s11, 3  ;;  %s2420_s20 = scalar_lea.vmem %s2462_s9, %s1783_s21 }
  0x19   : > { %v1823_v6 = vmul.f32 %v514_v4, %v510_v5  ;;  %v1834_v9 = vmul.f32 %v514_v4, %v509_v8  ;;  %s2484_s23 = smov (!%p480_p11, %s1561_s23), 31 }
  0x1a   : > { %s483_s24 = sadd.s32 %s1779_s18, %s2484_s23 }
  0x1b   : > { %s1844_s26 = scalar_select %p519_p12, 1, 0 }
  0x1c   : > { %637 = vrot.lane.b32.xlu1 %v1808_v2, %s1689_s27  ;;  %550 = vrot.lane.b32.xlu2 %v1792_v0, %s1690_s28  ;;  %s1563_s30 = sshll.u32 %s483_s24, 3 }
  0x1d   : > { %633 = vrot.lane.b32.xlu0 %v1811_v3, %s1689_s27  ;;  %s521_s10 = scvt.s32.f32 %s1844_s26  ;;  %s485_s17 = scalar_lea.vmem %s2455_s2, %s1563_s30 }
  0x1e   : > { %v517_v13 = vld [vmem:[%s485_s17] sm:$0xff]  ;;  %v518_v16 = vld [vmem:[%s485_s17 + $0x8] sm:$0xff]  ;;  %s1389_s17 = sld [smem:[#allocation2]] }
  0x1f   : > { %v522_v14 = vstv %s521_s10 }
  0x20   : > { %v1865_v15 = vmul.f32 %v522_v14, %v517_v13  ;;  %v1873_v17 = vmul.f32 %v522_v14, %v518_v16  ;;  %v1977_v13 = vperm.slane %v589_v62, 0  ;;  %v674_v62 = vperm.slane %v1915_v37, 3 }
  0x24   : > { %548 = vrot.lane.b32.xlu1 %v1811_v3, %s1690_s28  ;;  %544 = vrot.lane.b32.xlu2 %v1823_v6, %s1690_s28 }
  0x25   : > { %639 = vrot.lane.b32.xlu0 %v1826_v7, %s1689_s27 }
  0x2c   : > { %552 = vrot.lane.b32.xlu1 %v1808_v2, %s1690_s28  ;;  %542 = vrot.lane.b32.xlu2 %v1834_v9, %s1690_s28 }
  0x2d   : > { %629 = vrot.lane.b32.xlu0 %v1823_v6, %s1689_s27 }
  0x34   : > { %643 = vrot.lane.b32.xlu1 %v1847_v10, %s1689_s27  ;;  %645 = vrot.lane.b32.xlu2 %v1850_v11, %s1689_s27 }
  0x35   : > { %641 = vrot.lane.b32.xlu0 %v1854_v12, %s1689_s27 }
  0x3c   : > { %647 = vrot.lane.b32.xlu1 %v1865_v15, %s1689_s27  ;;  %554 = vrot.lane.b32.xlu2 %v1826_v7, %s1690_s28 }
  0x3d   : > { %627 = vrot.lane.b32.xlu0 %v1834_v9, %s1689_s27 }
  0x44   : > { %558 = vrot.lane.b32.xlu1 %v1847_v10, %s1690_s28  ;;  %529 = vrot.lane.b32.xlu2 %v1873_v17, %s1690_s28 }
  0x45   : > { %556 = vrot.lane.b32.xlu0 %v1854_v12, %s1690_s28 }
  0x4c   : > { %724 = vrot.lane.b32.xlu1 %v1873_v17, %s1689_s27  ;;  %710 = vrot.lane.b32.xlu2 %v1865_v15, %s1690_s28 }
  0x4d   : > { %560 = vrot.lane.b32.xlu0 %v1850_v11, %s1690_s28 }
  0x55   : > { %767 = vperm.xlu0 %1639, %v764_v51   ;;  %v677_v51 = vperm.slane %v2024_v44, 1 }
  0x6e   : > { %v547_v18 = vpop.permute.xlu2 %546 }
  0x76   : > { %v1887_v19 = vpop.permute.xlu2 %550 }
  0x7e   : > { %v1889_v21 = vpop.permute.xlu2 %544 }
  0x7f   : > { %v1926_v42 = vsel %vm562_vm1, %v1889_v21, %v547_v18 }
  0x80   : > { %v740_v46 = vmul.f32 %v1922_v41, %v1926_v42  ;;  %v715_v5 = vmul.f32 %v1934_v48, %v1926_v42 }
  0x86   : > { %v636_v20 = vpop.permute.xlu1 %635  ;;  %v1917_v38 = vpop.permute.xlu2 %542 }
  0x87   : > { %v1891_v22 = vpop.permute.xlu0 %631 }
  0x8e   : > { %v638_v31 = vpop.permute.xlu1 %637  ;;  %v1966_v63 = vpop.permute.xlu2 %645 }
  0x8f   : > { %v1903_v32 = vsel %vm649_vm0, %v636_v20, %v638_v31  ;;  %v634_v33 = vpop.permute.xlu0 %633 }
  0x90   : > { %v652_v34 = vsel %vm649_vm0, %v1891_v22, %v634_v33  ;;  %v1908_v35 = vsel %vm649_vm0, %v634_v33, %v636_v20  ;;  %v755_v36 = vmul.f32 %v1896_v27, %v1903_v32  ;;  %v2001_v33 = vperm.slane %v676_v24, 1 }
  0x91   : > { %v753_v39 = vmul.f32 %v1898_v28, %v652_v34  ;;  %v754_v40 = vmul.f32 %v1900_v29, %v1908_v35  ;;  %v729_v60 = vmul.f32 %v1900_v29, %v652_v34  ;;  %v730_v61 = vmul.f32 %v1896_v27, %v1908_v35 }
  0x92   : > { %821 = vmatpush.msra.mxu2 %v755_v36  ;;  %v702_v20 = vmul.f32 %v1896_v27, %v652_v34 }
  0x93   : > { %781 = vmatpush.msra.mxu0 %v753_v39  ;;  %801 = vmatpush.msra.mxu1 %v754_v40  ;;  %v2010_v39 = vld [vmem:[%s2456_s3] sm:$0xff] }
  0x94   : > { %822 = vmatpush.msra.mxu2 %v1792_v0 }
  0x95   : > { %782 = vmatpush.msra.mxu0 %v1795_v1  ;;  %802 = vmatpush.msra.mxu1 %v1811_v3 }
  0x96   : > { %v549_v47 = vpop.permute.xlu1 %548  ;;  %v555_v34 = vpop.permute.xlu2 %554 }
  0x97   : > { %v1942_v52 = vsel %vm562_vm1, %v547_v18, %v549_v47  ;;  %v1946_v53 = vsel %vm562_vm1, %v549_v47, %v1887_v19  ;;  %783 = vmatpush.msra.mxu0 %v740_v46  ;;  %v1948_v54 = vpop.permute.xlu0 %639  ;;  %v703_v46 = vmul.f32 %v1950_v55, %v1908_v35 }
  0x98   : > { %v1954_v56 = vsel %vm649_vm0, %v638_v31, %v1948_v54  ;;  %v741_v57 = vmul.f32 %v1934_v48, %v1942_v52  ;;  %v742_v58 = vmul.f32 %v1936_v49, %v1946_v53  ;;  %v716_v8 = vmul.f32 %v1936_v49, %v1942_v52 }
  0x99   : > { %v756_v59 = vmul.f32 %v1950_v55, %v1954_v56  ;;  %v618_v31 = vmul.f32 %v1936_v49, %v1926_v42  ;;  %v717_v40 = vmul.f32 %v1977_v13, %v1946_v53 }
  0x9a   : > { %803 = vmatpush.msra.mxu1 %v741_v57  ;;  %823 = vmatpush.msra.mxu2 %v742_v58  ;;  %v619_v57 = vmul.f32 %v1977_v13, %v1942_v52  ;;  %v2047_v58 = vperm.slane %v677_v51, 1 }
  0x9b   : > { %841 = vmatpush.msra.mxu3 %v756_v59 }
  0x9c   : > { %804 = vmatpush.msra.mxu1 %v729_v60  ;;  %824 = vmatpush.msra.mxu2 %v730_v61 }
  0x9d   : > { %842 = vmatpush.msra.mxu3 %v1808_v2 }
  0x9e   : > { %v1969_v4 = vpop.permute.xlu1 %552  ;;  %805 = vmatpush.msra.mxu1 %v1795_v1  ;;  %825 = vmatpush.msra.mxu2 %v1811_v3  ;;  %v2049_v59 = vpop.permute.xlu2 %529 }
  0x9f   : > { %v1982_v14 = vsel %vm562_vm1, %v1887_v19, %v1969_v4  ;;  %v630_v16 = vpop.permute.xlu0 %629  ;;  %v563_v19 = vsel %vm562_vm1, %v1917_v38, %v1889_v21 }
  0xa0   : > { %v651_v18 = vsel %vm649_vm0, %v630_v16, %v1891_v22  ;;  %806 = vmatpush.msra.mxu1 %v715_v5  ;;  %826 = vmatpush.msra.mxu2 %v716_v8  ;;  %v743_v23 = vmul.f32 %v1977_v13, %v1982_v14  ;;  %v731_v22 = vmul.f32 %v1950_v55, %v1903_v32 }
  0xa1   : > { %v728_v25 = vmul.f32 %v1898_v28, %v651_v18  ;;  %v701_v26 = vmul.f32 %v1900_v29, %v651_v18  ;;  %v714_v21 = vmul.f32 %v1922_v41, %v563_v19  ;;  %v617_v36 = vmul.f32 %v1934_v48, %v563_v19 }
  0xa2   : > { %827 = vmatpush.msra.mxu2 %v702_v20  ;;  %843 = vmatpush.msra.mxu3 %v743_v23  ;;  %v591_v18 = vperm.slane %v1915_v37, 4  ;;  %v2073_v20 = vperm.slane %v674_v62, 1  ;;  %v590_v23 = vperm.slane %v1915_v37, 2 }
  0xa3   : > { %784 = vmatpush.msra.mxu0 %v728_v25  ;;  %807 = vmatpush.msra.mxu1 %v701_v26 }
  0xa4   : > { %828 = vmatpush.msra.mxu2 %v1795_v1  ;;  %844 = vmatpush.msra.mxu3 %v731_v22  ;;  %v2082_v19 = vperm.slane %v591_v18, 0  ;;  %v704_v18 = vmul.f32 %v2073_v20, %v1903_v32 }
  0xa5   : > { %785 = vmatpush.msra.mxu0 %v1823_v6  ;;  %808 = vmatpush.msra.mxu1 %v1823_v6 }
  0xa6   : > { %v644_v1 = vpop.permute.xlu1 %643  ;;  %829 = vmatpush.msra.mxu2 %v618_v31  ;;  %845 = vmatpush.msra.mxu3 %v1792_v0  ;;  %v621_v32 = vmul.f32 %v2082_v19, %v1982_v14 }
  0xa7   : > { %v2017_v6 = vsel %vm649_vm0, %v644_v1, %v1966_v63  ;;  %786 = vmatpush.msra.mxu0 %v714_v21  ;;  %809 = vmatpush.msra.mxu1 %v617_v36  ;;  %v642_v42 = vpop.permute.xlu0 %641 }
  0xa8   : > { %v2027_v45 = vsel %vm649_vm0, %v642_v42, %v644_v1  ;;  %1569 = vmatmul.msk.f32.vlgmr.msra.gmra.mxu2 %vm770_vm2, %v2010_v39  ;;  %846 = vmatpush.msra.mxu3 %v717_v40  ;;  %v759_v47 = vmul.f32 %v2001_v33, %v2017_v6  ;;  %v656_v8 = vsel %vm649_vm0, %v1948_v54, %v642_v42  ;;  %v593_v1 = vperm.slane %v2024_v44, 0 }
  0xa9   : > { %v758_v50 = vmul.f32 %v2019_v43, %v2027_v45  ;;  %1568 = vmatmul.msk.f32.vlgmr.msra.gmra.mxu1 %vm770_vm2, %v2010_v39  ;;  %v757_v25 = vmul.f32 %v2073_v20, %v656_v8  ;;  %v568_v54 = vsel %vm562_vm1, %v1969_v4, %v555_v34  ;;  %v733_v21 = vmul.f32 %v2019_v43, %v656_v8 }
  0xaa   : > { %847 = vmatpush.msra.mxu3 %v703_v46  ;;  %901 = vmatpush.msrb.mxu2 %v759_v47  ;;  %v734_v36 = vmul.f32 %v2001_v33, %v2027_v45  ;;  %v732_v40 = vmul.f32 %v2073_v20, %v1954_v56  ;;  %v719_v46 = vmul.f32 %v2082_v19, %v568_v54 }
  0xab   : > { %881 = vmatpush.msrb.mxu1 %v758_v50  ;;  %v2113_v50 = vperm.slane %v593_v1, 0 }
  0xac   : > { %848 = vmatpush.msra.mxu3 %v1811_v3  ;;  %902 = vmatpush.msrb.mxu2 %v1847_v10 }
  0xad   : > { %882 = vmatpush.msrb.mxu1 %v1854_v12 }
  0xae   : > { %v2045_v35 = vpop.permute.xlu1 %647  ;;  %849 = vmatpush.msra.mxu3 %v619_v57 }
  0xaf   : > { %v2054_v60 = vsel %vm649_vm0, %v1966_v63, %v2045_v35  ;;  %v2056_v3 = vpop.permute.xlu0 %627  ;;  %1570 = vmatmul.msk.f32.vlgmr.msra.gmra.mxu3 %vm770_vm2, %v2010_v39  ;;  %v582_v63 = vsel %vm562_vm1, %v2049_v59, %v1917_v38 }
  0xb0   : > { %v650_v52 = vsel %vm649_vm0, %v2056_v3, %v630_v16  ;;  %v760_v61 = vmul.f32 %v2047_v58, %v2054_v60  ;;  %v592_v16 = vperm.slane %v1915_v37, 6  ;;  %v616_v24 = vmul.f32 %v1922_v41, %v582_v63 }
  0xb1   : > { %v700_v5 = vmul.f32 %v1898_v28, %v650_v52  ;;  %v705_v52 = vmul.f32 %v2019_v43, %v1954_v56  ;;  %v735_v56 = vmul.f32 %v2047_v58, %v2017_v6 }
  0xb2   : > { %921 = vmatpush.msrb.mxu3 %v760_v61  ;;  %v2084_v22 = vperm.slane %v592_v16, 0  ;;  %v706_v61 = vmul.f32 %v2001_v33, %v656_v8  ;;  %v678_v16 = vperm.slane %v2024_v44, 3 }
  0xb3   : > { %787 = vmatpush.msra.mxu0 %v700_v5  ;;  %v679_v5 = vperm.slane %v2024_v44, 5 }
  0xb4   : > { %922 = vmatpush.msrb.mxu3 %v1850_v11 }
  0xb5   : > { %788 = vmatpush.msra.mxu0 %v1834_v9  ;;  %v2092_v9 = vperm.slane %v590_v23, 0  ;;  %v595_v23 = vperm.slane %v2024_v44, 4 }
  0xb6   : > { %v559_v38 = vpop.permute.xlu1 %558 }
  0xb7   : > { %789 = vmatpush.msra.mxu0 %v616_v24  ;;  %v557_v26 = vpop.permute.xlu0 %556  ;;  %v718_v57 = vmul.f32 %v2092_v9, %v1982_v14  ;;  %v594_v24 = vperm.slane %v2024_v44, 2  ;;  %v620_v44 = vmul.f32 %v2092_v9, %v1946_v53 }
  0xb8   : > { %v2087_v37 = vsel %vm562_vm1, %v555_v34, %v557_v26  ;;  %v2090_v30 = vsel %vm562_vm1, %v557_v26, %v559_v38  ;;  %1567 = vmatmul.msk.f32.vlgmr.msra.gmra.mxu0 %vm770_vm2, %v2010_v39  ;;  %v744_v34 = vmul.f32 %v2092_v9, %v568_v54  ;;  %v699_v26 = vperm.slane %v679_v5, 1 }
  0xb9   : > { %861 = vmatpush.msrb.mxu0 %v757_v25  ;;  %v745_v31 = vmul.f32 %v2082_v19, %v2087_v37  ;;  %v746_v4 = vmul.f32 %v2084_v22, %v2090_v30  ;;  %v720_v47 = vmul.f32 %v2084_v22, %v2087_v37  ;;  %v711_v25 = vpop.permute.xlu2 %710  ;;  %v1692_v5 = vmov 0.0  }
  0xbb   : > { %862 = vmatpush.msrb.mxu0 %v1826_v7  ;;  %883 = vmatpush.msrb.mxu1 %v745_v31 }
  0xbc   : > { %903 = vmatpush.msrb.mxu2 %v746_v4  ;;  %v614_v4 = vperm.slane %v594_v24, 0 }
  0xbd   : > { %863 = vmatpush.msrb.mxu0 %v744_v34  ;;  %884 = vmatpush.msrb.mxu1 %v733_v21 }
  0xbe   : > { %904 = vmatpush.msrb.mxu2 %v734_v36  ;;  %v725_v63 = vpop.permute.xlu1 %724  ;;  %v623_v36 = vmul.f32 %v2113_v50, %v2087_v37 }
  0xbf   : > { %864 = vmatpush.msrb.mxu0 %v732_v40  ;;  %885 = vmatpush.msrb.mxu1 %v1826_v7  ;;  %v561_v42 = vpop.permute.xlu0 %560  ;;  %v752_v8 = vsel %vm649_vm0, %v725_v63, %v2056_v3  ;;  %v726_v31 = vsel %vm649_vm0, %v2045_v35, %v725_v63  ;;  %v698_v3 = vperm.slane %v678_v16, 1 }
  0xc0   : > { %905 = vmatpush.msrb.mxu2 %v1854_v12  ;;  %v2116_v51 = vsel %vm562_vm1, %v559_v38, %v561_v42  ;;  %v622_v38 = vmul.f32 %v2084_v22, %v568_v54  ;;  %v712_v14 = vsel %vm562_vm1, %v561_v42, %v711_v25  ;;  %v738_v54 = vsel %vm562_vm1, %v711_v25, %v2049_v59 }
  0xc1   : > { %865 = vmatpush.msrb.mxu0 %v1808_v2  ;;  %886 = vmatpush.msrb.mxu1 %v719_v46  ;;  %v747_v62 = vmul.f32 %v2113_v50, %v2116_v51  ;;  %v761_v35 = vmul.f32 %v726_v31, %v698_v3  ;;  %v748_v53 = vmul.f32 %v712_v14, %v614_v4 }
  0xc2   : > { %906 = vmatpush.msrb.mxu2 %v720_v47  ;;  %v707_v59 = vmul.f32 %v2047_v58, %v2027_v45  ;;  %v737_v21 = vmul.f32 %v726_v31, %v699_v26  ;;  %v736_v1 = vmul.f32 %v698_v3, %v2054_v60  ;;  %v708_v37 = vmul.f32 %v698_v3, %v2017_v6 }
  0xc3   : > { %866 = vmatpush.msrb.mxu0 %v718_v57  ;;  %887 = vmatpush.msrb.mxu1 %v705_v52 }
  0xc4   : > { %907 = vmatpush.msrb.mxu2 %v706_v61  ;;  %923 = vmatpush.msrb.mxu3 %v747_v62 }
  0xc5   : > { %867 = vmatpush.msrb.mxu0 %v704_v18  ;;  %888 = vmatpush.msrb.mxu1 %v1808_v2  ;;  %v615_v2 = vperm.slane %v595_v23, 0 }
  0xc6   : > { %908 = vmatpush.msrb.mxu2 %v1826_v7  ;;  %924 = vmatpush.msrb.mxu3 %v735_v56  ;;  %v762_v7 = vmul.f32 %v752_v8, %v699_v26 }
  0xc7   : > { %868 = vmatpush.msrb.mxu0 %v1792_v0  ;;  %889 = vmatpush.msrb.mxu1 %v621_v32  ;;  %v721_v0 = vmul.f32 %v2113_v50, %v2090_v30  ;;  %v749_v34 = vmul.f32 %v738_v54, %v615_v2  ;;  %v723_v45 = vmul.f32 %v712_v14, %v615_v2  ;;  %v768_v6 = vpop.permute.xlu0 %767 }
  0xc8   : > { %909 = vmatpush.msrb.mxu2 %v622_v38  ;;  %925 = vmatpush.msrb.mxu3 %v1847_v10  ;;  %v625_v40 = vmul.f32 %v615_v2, %v2116_v51 }
  0xc9   : > { %869 = vmatpush.msrb.mxu0 %v620_v44  ;;  %1572 = vmatmul.msk.f32.vlgmr.msrb.gmra.mxu1 %vm770_vm2, %v2010_v39 }
  0xca   : > { %1573 = vmatmul.msk.f32.vlgmr.msrb.gmra.mxu2 %vm770_vm2, %v2010_v39  ;;  %961 = vmatpush.msra.mxu1 %v762_v7  ;;  %v1027_v7 = vstv %s1844_s26 }
  0xcb   : > { %1571 = vmatmul.msk.f32.vlgmr.msrb.gmra.mxu0 %vm770_vm2, %v2010_v39  ;;  %926 = vmatpush.msrb.mxu3 %v721_v0  ;;  %vm1028_vm4 = vcmp.eq.s32.totalorder %v1027_v7, 1 }
  0xcc   : > { %941 = vmatpush.msra.mxu0 %v761_v35  ;;  %962 = vmatpush.msra.mxu1 %v1873_v17  ;;  %v722_v17 = vmul.f32 %v614_v4, %v2116_v51  ;;  %v1005_v51 = vstv %s1804_s29 }
  0xcd   : > { %927 = vmatpush.msrb.mxu3 %v707_v59  ;;  %vm1006_vm3 = vcmp.eq.s32.totalorder %v1005_v51, 1 }
  0xce   : > { %942 = vmatpush.msra.mxu0 %v1865_v15  ;;  %963 = vmatpush.msra.mxu1 %v749_v34  ;;  %v1577_v63 = vsel %vm1006_vm3, 1.0, %v1692_v5 }
  0xcf   : > { %928 = vmatpush.msrb.mxu3 %v1854_v12  ;;  %v709_v12 = vmul.f32 %v699_v26, %v2054_v60 }
  0xd0   : > { %943 = vmatpush.msra.mxu0 %v748_v53  ;;  %964 = vmatpush.msra.mxu1 %v737_v21  ;;  %v1578_v53 = vsel %vm1028_vm4, 1.0, %v1692_v5 }
  0xd1   : > { %929 = vmatpush.msrb.mxu3 %v623_v36 }
  0xd2   : > { %944 = vmatpush.msra.mxu0 %v736_v1  ;;  %1574 = vmatmul.msk.f32.vlgmr.msrb.gmra.mxu3 %vm770_vm2, %v2010_v39 }
  0xd3   : > { %965 = vmatpush.msra.mxu1 %v1865_v15  ;;  %v624_v15 = vmul.f32 %v614_v4, %v2090_v30 }
  0xd4   : > { %945 = vmatpush.msra.mxu0 %v1850_v11 }
  0xd5   : > { %966 = vmatpush.msra.mxu1 %v723_v45 }
  0xd6   : > { %946 = vmatpush.msra.mxu0 %v722_v17 }
  0xd7   : > { %967 = vmatpush.msra.mxu1 %v709_v12 }
  0xd8   : > { %947 = vmatpush.msra.mxu0 %v708_v37 }
  0xd9   : > { %968 = vmatpush.msra.mxu1 %v1850_v11 }
  0xda   : > { %948 = vmatpush.msra.mxu0 %v1847_v10 }
  0xdb   : > { %969 = vmatpush.msra.mxu1 %v625_v40 }
  0xdc   : > { %949 = vmatpush.msra.mxu0 %v624_v15  ;;  %1576 = vmatmul.msk.f32.vlgmr.msra.gmra.mxu1 %vm770_vm2, %v2010_v39 }
  0xdd   : > { %1575 = vmatmul.msk.f32.vlgmr.msra.gmra.mxu0 %vm770_vm2, %v2010_v39 }
 0x126   : > { %v811_v60 = vpop.f32.mrf.mxu1 }
 0x127   : > { %v812_v42 = vadd.f32 %v811_v60, %v768_v6 }
 0x129   : > { %v2181_v46 = vmax.f32 %v812_v42, 0.0 }
 0x12b   : > { %v831_v11 = vpop.f32.mrf.mxu2  ;;  %1093 = vrot.lane.b32.xlu2 %v2181_v46, %s1690_s28 }
 0x12c   : > { %v832_v10 = vadd.f32 %v831_v11, %v768_v6 }
 0x12e   : > { %v2185_v30 = vmax.f32 %v832_v10, 0.0 }
 0x130   : > { %1095 = vrot.lane.b32.xlu0 %v2185_v30, %s1690_s28  ;;  %1136 = vrot.lane.b32.xlu1 %v2185_v30, %s1689_s27 }
 0x132   : > { %v851_v47 = vpop.f32.mrf.mxu3 }
 0x133   : > { %v852_v39 = vadd.f32 %v851_v47, %v768_v6  ;;  %1134 = vrot.lane.b32.xlu2 %v2181_v46, %s1689_s27 }
 0x135   : > { %v2194_v57 = vmax.f32 %v852_v39, 0.0  ;;  %v791_v52 = vpop.f32.mrf.mxu0 }
 0x136   : > { %v792_v61 = vadd.f32 %v791_v52, %v768_v6 }
 0x138   : > { %1097 = vrot.lane.b32.xlu1 %v2194_v57, %s1690_s28  ;;  %v974_v62 = vmax.f32 %v792_v61, 0.0 }
 0x13a   : > { %v2200_v18 = vmul.f32 %v1577_v63, %v974_v62 }
 0x13b   : > { %1138 = vrot.lane.b32.xlu2 %v2194_v57, %s1689_s27 }
 0x140   : > { %1091 = vrot.lane.b32.xlu1 %v2200_v18, %s1690_s28 }
 0x146   : > { %v891_v16 = vpop.f32.mrf.mxu1 }
 0x147   : > { %v892_v23 = vadd.f32 %v891_v16, %v768_v6 }
 0x148   : > { %v871_v56 = vpop.f32.mrf.mxu0 }
 0x149   : > { %v872_v8 = vadd.f32 %v871_v56, %v768_v6  ;;  %v2204_v24 = vmax.f32 %v892_v23, 0.0 }
 0x14b   : > { %v2206_v32 = vmax.f32 %v872_v8, 0.0  ;;  %1142 = vrot.lane.b32.xlu0 %v2204_v24, %s1689_s27 }
 0x14d   : > { %v911_v38 = vpop.f32.mrf.mxu2  ;;  %1099 = vrot.lane.b32.xlu2 %v2206_v32, %s1690_s28  ;;  %1140 = vrot.lane.b32.xlu1 %v2206_v32, %s1689_s27 }
 0x14e   : > { %v912_v25 = vadd.f32 %v911_v38, %v768_v6 }
 0x150   : > { %v2214_v26 = vmax.f32 %v912_v25, 0.0 }
 0x153   : > { %1101 = vrot.lane.b32.xlu0 %v2204_v24, %s1690_s28 }
 0x155   : > { %1144 = vrot.lane.b32.xlu1 %v2214_v26, %s1689_s27  ;;  %v931_v31 = vpop.f32.mrf.mxu3 }
 0x156   : > { %v932_v44 = vadd.f32 %v931_v31, %v768_v6 }
 0x158   : > { %v2220_v3 = vmax.f32 %v932_v44, 0.0 }
 0x159   : > { %v971_v2 = vpop.f32.mrf.mxu1 }
 0x15a   : > { %v951_v14 = vpop.f32.mrf.mxu0  ;;  %v972_v54 = vadd.f32 %v971_v2, %v768_v6  ;;  %1146 = vrot.lane.b32.xlu2 %v2220_v3, %s1689_s27 }
 0x15b   : > { %v952_v35 = vadd.f32 %v951_v14, %v768_v6 }
 0x15c   : > { %v983_v0 = vmax.f32 %v972_v54, 0.0 }
 0x15d   : > { %v2225_v4 = vmax.f32 %v952_v35, 0.0  ;;  %1103 = vrot.lane.b32.xlu1 %v2214_v26, %s1690_s28 }
 0x15e   : > { %v2231_v59 = vmul.f32 %v1578_v53, %v983_v0 }
 0x15f   : > { %1148 = vrot.lane.b32.xlu0 %v2225_v4, %s1689_s27 }
 0x162   : > { %1105 = vrot.lane.b32.xlu2 %v2220_v3, %s1690_s28 }
 0x165   : > { %1186 = vrot.lane.b32.xlu1 %v2231_v59, %s1689_s27 }
 0x167   : > { %1132 = vrot.lane.b32.xlu0 %v2200_v18, %s1689_s27 }
 0x16a   : > { %1080 = vrot.lane.b32.xlu2 %v2231_v59, %s1690_s28 }
 0x16f   : > { %1174 = vrot.lane.b32.xlu0 %v2225_v4, %s1690_s28 }
 0x185   : > { %v1094_v34 = vpop.permute.xlu2 %1093 }
 0x18d   : > { %v2243_v21 = vpop.permute.xlu2 %1134 }
 0x195   : > { %v1139_v36 = vpop.permute.xlu2 %1138 }
 0x1a2   : > { %v1096_v1 = vpop.permute.xlu0 %1095  ;;  %v1137_v45 = vpop.permute.xlu1 %1136 }
 0x1a3   : > { %v1152_v17 = vsel %vm649_vm0, %v1137_v45, %v1139_v36  ;;  %v1108_v37 = vsel %vm562_vm1, %v1094_v34, %v1096_v1  ;;  %v1151_v40 = vsel %vm649_vm0, %v2243_v21, %v1137_v45 }
 0x1a4   : > { %v1211_v12 = vmul.f32 %v1152_v17, %v1898_v28  ;;  %v1200_v15 = vmul.f32 %v1108_v37, %v1922_v41  ;;  %v1190_v6 = vmul.f32 %v1151_v40, %v1898_v28  ;;  %v1191_v25 = vmul.f32 %v1152_v17, %v1900_v29 }
 0x1a5   : > { %v1179_v54 = vmul.f32 %v1108_v37, %v1934_v48  ;;  %v1167_v0 = vmul.f32 %v1151_v40, %v1900_v29  ;;  %v1168_v53 = vmul.f32 %v1152_v17, %v1896_v27  ;;  %v2309_v17 = vld [vmem:[%s2458_s5] sm:$0xff] }
 0x1a6   : > { %1236 = vmatpush.msra.mxu2 %v1211_v12 }
 0x1a7   : > { %v1100_v47 = vpop.permute.xlu2 %1099 }
 0x1a8   : > { %1237 = vmatpush.msra.mxu2 %v2185_v30 }
 0x1aa   : > { %v1098_v60 = vpop.permute.xlu1 %1097  ;;  %1238 = vmatpush.msra.mxu2 %v1200_v15 }
 0x1ab   : > { %v2267_v63 = vsel %vm562_vm1, %v1096_v1, %v1098_v60  ;;  %v2270_v16 = vsel %vm562_vm1, %v1098_v60, %v1100_v47 }
 0x1ac   : > { %1239 = vmatpush.msra.mxu2 %v1190_v6  ;;  %v1201_v56 = vmul.f32 %v2267_v63, %v1934_v48  ;;  %v1202_v8 = vmul.f32 %v2270_v16, %v1936_v49  ;;  %v1180_v35 = vmul.f32 %v2267_v63, %v1936_v49 }
 0x1ae   : > { %1240 = vmatpush.msra.mxu2 %v2181_v46 }
 0x1b2   : > { %v2254_v42 = vpop.permute.xlu1 %1091 }
 0x1b3   : > { %v1107_v11 = vsel %vm562_vm1, %v2254_v42, %v1094_v34 }
 0x1b4   : > { %v1178_v10 = vmul.f32 %v1107_v11, %v1922_v41  ;;  %v1147_v23 = vpop.permute.xlu2 %1146 }
 0x1b6   : > { %1241 = vmatpush.msra.mxu2 %v1178_v10 }
 0x1bd   : > { %v1143_v39 = vpop.permute.xlu0 %1142 }
 0x1bf   : > { %v1141_v51 = vpop.permute.xlu1 %1140 }
 0x1c0   : > { %v1153_v52 = vsel %vm649_vm0, %v1139_v36, %v1141_v51  ;;  %v2261_v61 = vsel %vm649_vm0, %v1141_v51, %v1143_v39  ;;  %v2298_v36 = vpop.permute.xlu2 %1105 }
 0x1c1   : > { %v1212_v62 = vmul.f32 %v1153_v52, %v1900_v29  ;;  %v1213_v5 = vmul.f32 %v2261_v61, %v1896_v27  ;;  %v1192_v31 = vmul.f32 %v1153_v52, %v1896_v27  ;;  %v1193_v45 = vmul.f32 %v2261_v61, %v1950_v55 }
 0x1c2   : > { %v1124_v29 = vmul.f32 %v1107_v11, %v1934_v48  ;;  %v1125_v27 = vmul.f32 %v1108_v37, %v1936_v49  ;;  %v1181_v49 = vmul.f32 %v2270_v16, %v1977_v13  ;;  %v1169_v37 = vmul.f32 %v1153_v52, %v1950_v55 }
 0x1c3   : > { %1256 = vmatpush.msra.mxu3 %v1212_v62  ;;  %1276 = vmatpush.msrb.mxu0 %v1213_v5  ;;  %v1126_v5 = vmul.f32 %v2267_v63, %v1977_v13 }
 0x1c5   : > { %1257 = vmatpush.msra.mxu3 %v2194_v57  ;;  %1277 = vmatpush.msrb.mxu0 %v2206_v32  ;;  %v1102_v44 = vpop.permute.xlu0 %1101 }
 0x1c6   : > { %v2286_v14 = vsel %vm562_vm1, %v1100_v47, %v1102_v44 }
 0x1c7   : > { %1258 = vmatpush.msra.mxu3 %v1201_v56  ;;  %1278 = vmatpush.msrb.mxu0 %v1202_v8  ;;  %v1145_v38 = vpop.permute.xlu1 %1144  ;;  %v1203_v34 = vmul.f32 %v2286_v14, %v1977_v13 }
 0x1c8   : > { %v2281_v2 = vsel %vm649_vm0, %v1143_v39, %v1145_v38  ;;  %v1081_v10 = vpop.permute.xlu2 %1080 }
 0x1c9   : > { %v1214_v7 = vmul.f32 %v2281_v2, %v1950_v55  ;;  %1259 = vmatpush.msra.mxu3 %v1191_v25  ;;  %1279 = vmatpush.msrb.mxu0 %v1192_v31  ;;  %v1122_v8 = vsel %vm562_vm1, %v1081_v10, %v2254_v42 }
 0x1ca   : > { %v1123_v13 = vmul.f32 %v1122_v8, %v1922_v41  ;;  %v1648_v8 = vld [vmem:[%s1789_s25 + $0x20] sm:$0xff] }
 0x1cb   : > { %1260 = vmatpush.msra.mxu3 %v2185_v30  ;;  %1280 = vmatpush.msrb.mxu0 %v2194_v57 }
 0x1cc   : > { %1296 = vmatpush.msrb.mxu1 %v1214_v7 }
 0x1cd   : > { %1261 = vmatpush.msra.mxu3 %v1179_v54  ;;  %1281 = vmatpush.msrb.mxu0 %v1180_v35 }
 0x1ce   : > { %1297 = vmatpush.msrb.mxu1 %v2204_v24 }
 0x1cf   : > { %1262 = vmatpush.msra.mxu3 %v1167_v0  ;;  %1282 = vmatpush.msrb.mxu0 %v1168_v53  ;;  %v1104_v1 = vpop.permute.xlu1 %1103  ;;  %v1170_v0 = vmul.f32 %v2261_v61, %v2073_v20 }
 0x1d0   : > { %1298 = vmatpush.msrb.mxu1 %v1203_v34  ;;  %v2318_v48 = vsel %vm562_vm1, %v1104_v1, %v2298_v36  ;;  %v2342_v55 = vsel %vm562_vm1, %v1102_v44, %v1104_v1 }
 0x1d1   : > { %v1149_v12 = vpop.permute.xlu0 %1148  ;;  %1263 = vmatpush.msra.mxu3 %v2181_v46  ;;  %1283 = vmatpush.msrb.mxu0 %v2185_v30  ;;  %v1220_v46 = vld [vmem:[%s2459_s6] sm:$0xff]  ;;  %v2331_v30 = vsel %vm649_vm0, %v1145_v38, %v1147_v23  ;;  %v1205_v60 = vmul.f32 %v2318_v48, %v2082_v19  ;;  %v1184_v44 = vmul.f32 %v2318_v48, %v2084_v22 }
 0x1d2   : > { %v2312_v40 = vsel %vm649_vm0, %v1147_v23, %v1149_v12  ;;  %1299 = vmatpush.msrb.mxu1 %v1193_v45  ;;  %1223 = vperm.xlu1 %1640, %v1220_v46   ;;  %v1195_v51 = vmul.f32 %v2331_v30, %v2019_v43  ;;  %v1172_v54 = vmul.f32 %v2331_v30, %v2001_v33  ;;  %v1643_v45 = vld [vmem:[%s1789_s25 + $0x18] sm:$0xff] }
 0x1d3   : > { %v1216_v15 = vmul.f32 %v2312_v40, %v2019_v43  ;;  %1264 = vmatpush.msra.mxu3 %v1124_v29  ;;  %1284 = vmatpush.msrb.mxu0 %v1125_v27  ;;  %v1196_v25 = vmul.f32 %v2312_v40, %v2001_v33  ;;  %v1173_v35 = vmul.f32 %v2312_v40, %v2047_v58 }
 0x1d4   : > { %1300 = vmatpush.msrb.mxu1 %v2206_v32  ;;  %1580 = vmatmul.msk.f32.vlgmr.msra.gmra.mxu3 %vm770_vm2, %v2309_v17 }
 0x1d5   : > { %1336 = vmatpush.msrb.mxu3 %v1216_v15  ;;  %1581 = vmatmul.msk.f32.vlgmr.msrb.gmra.mxu0 %vm770_vm2, %v2309_v17  ;;  %v1644_v15 = vld [vmem:[%s1789_s25] sm:$0xff] }
 0x1d6   : > { %1301 = vmatpush.msrb.mxu1 %v1181_v49 }
 0x1d7   : > { %1337 = vmatpush.msrb.mxu3 %v2220_v3  ;;  %v1187_v6 = vpop.permute.xlu1 %1186 }
 0x1d8   : > { %1302 = vmatpush.msrb.mxu1 %v1169_v37  ;;  %v1188_v11 = vsel %vm649_vm0, %v1149_v12, %v1187_v6 }
 0x1d9   : > { %v1217_v47 = vmul.f32 %v1188_v11, %v2001_v33  ;;  %v1133_v39 = vpop.permute.xlu0 %1132  ;;  %1338 = vmatpush.msrb.mxu3 %v1205_v60  ;;  %v1197_v31 = vmul.f32 %v1188_v11, %v2047_v58  ;;  %v1130_v33 = vmul.f32 %v2318_v48, %v2113_v50 }
 0x1da   : > { %v1150_v52 = vsel %vm649_vm0, %v1133_v39, %v2243_v21  ;;  %v1210_v62 = vsel %vm649_vm0, %v1187_v6, %v1133_v39  ;;  %1303 = vmatpush.msrb.mxu1 %v2194_v57  ;;  %v1183_v21 = vmul.f32 %v2342_v55, %v2082_v19  ;;  %v1215_v57 = vmul.f32 %v2331_v30, %v2073_v20  ;;  %v1645_v30 = vld [vmem:[%s1789_s25 + $0x28] sm:$0xff] }
 0x1db   : > { %v1166_v23 = vmul.f32 %v1150_v52, %v1898_v28  ;;  %v1218_v56 = vmul.f32 %v1210_v62, %v2047_v58  ;;  %1339 = vmatpush.msrb.mxu3 %v1195_v51  ;;  %1356 = vmatpush.msra.mxu0 %v1217_v47  ;;  %v1171_v28 = vmul.f32 %v2281_v2, %v2019_v43  ;;  %v1646_v51 = vld [vmem:[%s1789_s25 + $0x30] sm:$0xff]  ;;  %v1647_v62 = vld [vmem:[%s1789_s25 + $0x38] sm:$0xff] }
 0x1dc   : > { %1304 = vmatpush.msrb.mxu1 %v1126_v5  ;;  %v1127_v58 = vmul.f32 %v2270_v16, %v2092_v9 }
 0x1dd   : > { %1242 = vmatpush.msra.mxu2 %v1166_v23  ;;  %1340 = vmatpush.msrb.mxu3 %v2214_v26 }
 0x1de   : > { %1376 = vmatpush.msra.mxu1 %v1218_v56  ;;  %1357 = vmatpush.msra.mxu0 %v2225_v4 }
 0x1df   : > { %1243 = vmatpush.msra.mxu2 %v2200_v18  ;;  %1341 = vmatpush.msrb.mxu3 %v1183_v21  ;;  %v1128_v18 = vmul.f32 %v2286_v14, %v2082_v19  ;;  %v1194_v19 = vmul.f32 %v2281_v2, %v2073_v20  ;;  %v1182_v2 = vmul.f32 %v2286_v14, %v2092_v9  ;;  %v1642_v14 = vld [vmem:[%s1789_s25 + $0x8] sm:$0xff] }
 0x1e0   : > { %1377 = vmatpush.msra.mxu1 %v2231_v59  ;;  %v1204_v59 = vmul.f32 %v2342_v55, %v2092_v9 }
 0x1e1   : > { %v1175_v42 = vpop.permute.xlu0 %1174  ;;  %1244 = vmatpush.msra.mxu2 %v1123_v13  ;;  %1342 = vmatpush.msrb.mxu3 %v1171_v28 }
 0x1e2   : > { %v1176_v63 = vsel %vm562_vm1, %v2298_v36, %v1175_v42  ;;  %v1198_v38 = vsel %vm562_vm1, %v1175_v42, %v1081_v10  ;;  %1582 = vmatmul.msk.f32.vlgmr.msrb.gmra.mxu1 %vm770_vm2, %v2309_v17  ;;  %1579 = vmatmul.msk.f32.vlgmr.msra.gmra.mxu2 %vm770_vm2, %v2309_v17 }
 0x1e3   : > { %1316 = vmatpush.msrb.mxu2 %v1215_v57  ;;  %v1206_v41 = vmul.f32 %v1176_v63, %v2084_v22  ;;  %v1207_v43 = vmul.f32 %v1198_v38, %v2113_v50  ;;  %1343 = vmatpush.msrb.mxu3 %v2204_v24  ;;  %v1185_v7 = vmul.f32 %v1176_v63, %v2113_v50  ;;  %v1390_v50 = vstv %s1389_s17 }
 0x1e5   : > { %1317 = vmatpush.msrb.mxu2 %v2214_v26  ;;  %1344 = vmatpush.msrb.mxu3 %v1128_v18 }
 0x1e6   : > { %1358 = vmatpush.msra.mxu0 %v1206_v41  ;;  %1378 = vmatpush.msra.mxu1 %v1207_v43 }
 0x1e7   : > { %1318 = vmatpush.msrb.mxu2 %v1204_v59  ;;  %1584 = vmatmul.msk.f32.vlgmr.msrb.gmra.mxu3 %vm770_vm2, %v2309_v17 }
 0x1e8   : > { %1359 = vmatpush.msra.mxu0 %v1196_v25  ;;  %1379 = vmatpush.msra.mxu1 %v1197_v31 }
 0x1e9   : > { %1319 = vmatpush.msrb.mxu2 %v1194_v19 }
 0x1ea   : > { %1360 = vmatpush.msra.mxu0 %v2220_v3  ;;  %1380 = vmatpush.msra.mxu1 %v2225_v4 }
 0x1eb   : > { %1320 = vmatpush.msrb.mxu2 %v2204_v24  ;;  %v1129_v24 = vmul.f32 %v2342_v55, %v2084_v22 }
 0x1ec   : > { %1361 = vmatpush.msra.mxu0 %v1184_v44  ;;  %1381 = vmatpush.msra.mxu1 %v1185_v7 }
 0x1ed   : > { %1321 = vmatpush.msrb.mxu2 %v1182_v2 }
 0x1ee   : > { %1362 = vmatpush.msra.mxu0 %v1172_v54  ;;  %1382 = vmatpush.msra.mxu1 %v1173_v35 }
 0x1ef   : > { %1322 = vmatpush.msrb.mxu2 %v1170_v0 }
 0x1f0   : > { %1363 = vmatpush.msra.mxu0 %v2214_v26  ;;  %1383 = vmatpush.msra.mxu1 %v2220_v3  ;;  %v1641_v3 = vld [vmem:[%s1789_s25 + $0x10] sm:$0xff] }
 0x1f1   : > { %1323 = vmatpush.msrb.mxu2 %v2206_v32 }
 0x1f2   : > { %1364 = vmatpush.msra.mxu0 %v1129_v24  ;;  %1384 = vmatpush.msra.mxu1 %v1130_v33 }
 0x1f3   : > { %1324 = vmatpush.msrb.mxu2 %v1127_v58  ;;  %1585 = vmatmul.msk.f32.vlgmr.msra.gmra.mxu0 %vm770_vm2, %v2309_v17 }
 0x1f4   : > { %1583 = vmatmul.msk.f32.vlgmr.msrb.gmra.mxu2 %vm770_vm2, %v2309_v17  ;;  %1586 = vmatmul.msk.f32.vlgmr.msra.gmra.mxu1 %vm770_vm2, %v2309_v17 }
 0x244   : > { %v1224_v20 = vpop.permute.xlu1 %1223 }
 0x252   : > { %v1286_v22 = vpop.f32.mrf.mxu0 }
 0x253   : > { %v1287_v32 = vadd.f32 %v1286_v22, %v1224_v20 }
 0x255   : > { %v1393_v9 = vmul.f32 %v1390_v50, %v1287_v32 }
 0x257   : > { %v1266_v26 = vpop.f32.mrf.mxu3  ;;  %v1401_v4 = vadd.f32 %v1641_v3, %v1393_v9 }
 0x258   : > { %v1267_v61 = vadd.f32 %v1266_v26, %v1224_v20 }
 0x259   : > { %1409 = vst [vmem:[%s2420_s20 + $0x10] sm:$0xff] %v1401_v4 }
 0x25a   : > { %v1392_v16 = vmul.f32 %v1390_v50, %v1267_v61 }
 0x25c   : > { %v1400_v53 = vadd.f32 %v1642_v14, %v1392_v16 }
 0x25e   : > { %1408 = vst [vmem:[%s2420_s20 + $0x8] sm:$0xff] %v1400_v53 }
 0x25f   : > { %v1306_v34 = vpop.f32.mrf.mxu1 }
 0x260   : > { %v1307_v36 = vadd.f32 %v1306_v34, %v1224_v20 }
 0x262   : > { %v1394_v1 = vmul.f32 %v1390_v50, %v1307_v36 }
 0x264   : > { %v1402_v29 = vadd.f32 %v1643_v45, %v1394_v1 }
 0x265   : > { %v1246_v12 = vpop.f32.mrf.mxu2 }
 0x266   : > { %1410 = vst [vmem:[%s2420_s20 + $0x18] sm:$0xff] %v1402_v29  ;;  %v1247_v27 = vadd.f32 %v1246_v12, %v1224_v20 }
 0x268   : > { %v1391_v17 = vmul.f32 %v1390_v50, %v1247_v27 }
 0x26a   : > { %v1346_v40 = vpop.f32.mrf.mxu3  ;;  %v1399_v48 = vadd.f32 %v1644_v15, %v1391_v17 }
 0x26b   : > { %v1347_v49 = vadd.f32 %v1346_v40, %v1224_v20 }
 0x26c   : > { %1407 = vst [vmem:[%s2420_s20] sm:$0xff] %v1399_v48 }
 0x26d   : > { %v1396_v46 = vmul.f32 %v1390_v50, %v1347_v49 }
 0x26f   : > { %v1404_v37 = vadd.f32 %v1645_v30, %v1396_v46 }
 0x270   : > { %v1366_v6 = vpop.f32.mrf.mxu0 }
 0x271   : > { %1412 = vst [vmem:[%s2420_s20 + $0x28] sm:$0xff] %v1404_v37  ;;  %v1367_v60 = vadd.f32 %v1366_v6, %v1224_v20  ;;  %v1386_v11 = vpop.f32.mrf.mxu1 }
 0x272   : > { %v1387_v10 = vadd.f32 %v1386_v11, %v1224_v20 }
 0x273   : > { %v1397_v47 = vmul.f32 %v1390_v50, %v1367_v60 }
 0x274   : > { %v1398_v39 = vmul.f32 %v1390_v50, %v1387_v10 }
 0x275   : > { %v1405_v55 = vadd.f32 %v1646_v51, %v1397_v47 }
 0x276   : > { %v1406_v5 = vadd.f32 %v1647_v62, %v1398_v39 }
 0x277   : > { %v1326_v52 = vpop.f32.mrf.mxu2  ;;  %1413 = vst [vmem:[%s2420_s20 + $0x30] sm:$0xff] %v1405_v55 }
 0x278   : > { %v1327_v23 = vadd.f32 %v1326_v52, %v1224_v20  ;;  %1414 = vst [vmem:[%s2420_s20 + $0x38] sm:$0xff] %v1406_v5 }
 0x27a   : > { %v1395_v56 = vmul.f32 %v1390_v50, %v1327_v23 }
 0x27c   : > { %v1403_v21 = vadd.f32 %v1648_v8, %v1395_v56 }
 0x27e   : > { %1411 = vst [vmem:[%s2420_s20 + $0x20] sm:$0xff] %v1403_v21 }
 0x27f PF: > { %s20_s15 = sadd.s32 1, %s1687_s15   ;;  %s2463_s11 = smov %s1679_s13 }
 0x280   : > { %p17_p13 = scmp.ge.s32.totalorder %s20_s15, 10   ;;  %s2464_s12 = smov %s1683_s14 }
 0x281   : > { %s2465_s13 = smov %s2468_s8  ;;  %s2466_s14 = smov %s2472_s16 }
 0x282   :  { %19 = sbr.rel (!%p17_p13) target bundleno = 3 (0x3), region = 92 }

</bundles_post_ra>
